<compile_context>
chip_gen: v6e
topology: v6e:2x2x1
jax: 0.10.0
libtpu: 0.0.40
codegen_flags: <defaults>
</compile_context>

<pallas_src>
import functools

import jax
import jax.numpy as jnp
from jax.experimental import pallas as pl
from jax.experimental.pallas import tpu as pltpu

BN_EPS = 1e-5


def _fold_bn(bn):
    gamma, beta, mean, var = bn
    scale = gamma * jax.lax.rsqrt(var + BN_EPS)
    bias = beta - mean * scale
    return scale, bias


# ----------------------------------------------------------------------------
# Pallas kernel: one fused conv(+BN)(+shortcut)(+ReLU) per grid step (one image)
# ----------------------------------------------------------------------------
def _make_kernel(taps, n_phases, L, relu, res_kind):
    """taps: list of (phase_index, lane_offset); L = Ho*Wh output lanes."""

    def kernel(x_ref, w_ref, b_ref, *rest):
        if res_kind == "identity":
            res_ref, o_ref = rest
        elif res_kind == "conv":
            xs_ref, wsc_ref, bsc_ref, o_ref = rest
        else:
            (o_ref,) = rest

        # Load each phase image once: (Cin, F) bf16, F = Hh*Wh + tail.
        phases = [x_ref[0, p] for p in range(n_phases)]

        # Transposed im2col: rows ordered (dy, dx, cin) to match the folded
        # weight; every piece is a contiguous lane window of one phase image.
        pieces = [phases[pidx][:, off:off + L] for (pidx, off) in taps]
        rhs = pieces[0] if len(pieces) == 1 else jnp.concatenate(pieces, axis=0)

        # Single MXU matmul: (Cout, K) @ (K, Ho*Wh) -> (Cout, Ho*Wh), f32 acc.
        out = jnp.dot(w_ref[...], rhs, preferred_element_type=jnp.float32)
        out = out + b_ref[...]                       # folded-BN bias (Cout, 1)

        if res_kind == "conv":                       # fused 1x1 conv + BN shortcut
            sc = jnp.dot(wsc_ref[...], xs_ref[0],
                         preferred_element_type=jnp.float32)
            out = out + sc + bsc_ref[...]
        elif res_kind == "identity":                 # fused identity residual
            out = out + res_ref[0].astype(jnp.float32)

        if relu:
            out = jnp.maximum(out, 0.0)
        o_ref[0] = out.astype(o_ref.dtype)

    return kernel


# ----------------------------------------------------------------------------
# Wrapper: fused conv + BN (inference) [+ residual / 1x1-conv shortcut] [+ ReLU]
# ----------------------------------------------------------------------------
def conv_bn(x, w_hwio, bn, *, stride, pad, relu, residual=None,
            sc_input=None, sc_w=None, sc_bn=None, out_dtype=None,
            mxu_dtype=jnp.bfloat16):
    """x: (N, Cin, H, W) NCHW.  Returns (N, Cout, Ho, Wo) NCHW."""
    N, Cin, H, W = x.shape
    kh, kw, _, Cout = w_hwio.shape
    s = stride
    out_dtype = x.dtype if out_dtype is None else out_dtype

    Ho = (H + 2 * pad - kh) // s + 1
    Wo = (W + 2 * pad - kw) // s + 1
    Hp, Wp = H + 2 * pad, W + 2 * pad
    Hp_r = -(-Hp // s) * s                    # round padded extent up to stride
    Wp_r = -(-Wp // s) * s
    Hh, Wh = Hp_r // s, Wp_r // s             # per-phase spatial extent
    nph, npw = min(kh, s), min(kw, s)
    P = nph * npw                             # number of stride phases
    L = Ho * Wh                               # output lanes (Wh-Wo junk cols/row)
    tail = (kw - 1) // s                      # lane overrun of the largest tap
    F = Hh * Wh + tail
    K = kh * kw * Cin

    # -------- wrapper-side layout prep (cheap XLA ops, fused with the pad) ---
    xp = jnp.pad(x, ((0, 0), (0, 0),
                     (pad, Hp_r - H - pad), (pad, Wp_r - W - pad)))
    xp = xp.astype(mxu_dtype)
    # polyphase decomposition: strided conv == sum of stride-1 taps over the
    # s*s phase sub-images  ->  no strided access and no wasted MXU work.
    phases = [xp[:, :, p::s, q::s] for p in range(nph) for q in range(npw)]
    x_ph = jnp.stack(phases, axis=1).reshape(N, P, Cin, Hh * Wh)
    if tail:
        x_ph = jnp.pad(x_ph, ((0, 0), (0, 0), (0, 0), (0, tail)))

    # BN scale folded into the weights; transposed so the matmul output is
    # (Cout, Ho*Wh): lane-dense spatial axis, native NCHW store.
    scale, bias = _fold_bn(bn)
    w2d = (w_hwio * scale[None, None, None, :]).reshape(K, Cout).T
    w2d = w2d.astype(mxu_dtype)
    b2d = bias.reshape(Cout, 1).astype(jnp.float32)

    taps = []
    for dy in range(kh):
        for dx in range(kw):
            taps.append(((dy % s) * npw + (dx % s), (dy // s) * Wh + (dx // s)))

    in_specs = [
        pl.BlockSpec((1, P, Cin, F), lambda n: (n, 0, 0, 0)),
        pl.BlockSpec((Cout, K), lambda n: (0, 0)),
        pl.BlockSpec((Cout, 1), lambda n: (0, 0)),
    ]
    args = [x_ph, w2d, b2d]

    if residual is not None:
        res_kind = "identity"
        res = jnp.pad(residual, ((0, 0), (0, 0), (0, 0), (0, Wh - Wo)))
        res = res.reshape(N, Cout, L)
        in_specs.append(pl.BlockSpec((1, Cout, L), lambda n: (n, 0, 0)))
        args.append(res)
    elif sc_input is not None:
        res_kind = "conv"
        Cin0 = sc_input.shape[1]
        xs = jnp.pad(sc_input, ((0, 0), (0, 0), (0, 0), (0, Wh - Wo)))
        xs = xs.reshape(N, Cin0, L).astype(mxu_dtype)
        sc_scale, sc_bias = _fold_bn(sc_bn)
        wsc = (sc_w.reshape(Cin0, Cout) * sc_scale[None, :]).T.astype(mxu_dtype)
        bsc = sc_bias.reshape(Cout, 1).astype(jnp.float32)
        in_specs += [
            pl.BlockSpec((1, Cin0, L), lambda n: (n, 0, 0)),
            pl.BlockSpec((Cout, Cin0), lambda n: (0, 0)),
            pl.BlockSpec((Cout, 1), lambda n: (0, 0)),
        ]
        args += [xs, wsc, bsc]
    else:
        res_kind = None

    kernel = _make_kernel(taps, P, L, relu, res_kind)
    out_flat = pl.pallas_call(
        kernel,
        out_shape=jax.ShapeDtypeStruct((N, Cout, L), out_dtype),
        grid=(N,),
        in_specs=in_specs,
        out_specs=pl.BlockSpec((1, Cout, L), lambda n: (n, 0, 0)),
        compiler_params=pltpu.CompilerParams(
            dimension_semantics=("parallel",),
            vmem_limit_bytes=32 * 1024 * 1024),
    )(*args)

    # drop the Wh-Wo junk columns; the reshape itself is metadata-only.
    return out_flat.reshape(N, Cout, Ho, Wh)[:, :, :, :Wo]


# ----------------------------------------------------------------------------
# BasicBlock forward (NCHW in / NCHW out, like the PyTorch module)
# ----------------------------------------------------------------------------
def basic_block_forward(x_nchw, params, stride):
    Cin = x_nchw.shape[1]
    planes = params["w1"].shape[-1]

    # conv1(3x3, stride) + bn1 + relu  (bf16 output: it only feeds the next MXU)
    out1 = conv_bn(x_nchw, params["w1"], params["bn1"], stride=stride, pad=1,
                   relu=True, out_dtype=jnp.bfloat16)

    if stride != 1 or Cin != planes:
        # conv2 + bn2 + fused (1x1 conv + bn) shortcut + relu, single kernel
        xs = x_nchw[:, :, ::stride, ::stride]
        out = conv_bn(out1, params["w2"], params["bn2"], stride=1, pad=1,
                      relu=True, sc_input=xs, sc_w=params["w_sc"],
                      sc_bn=params["bn_sc"], out_dtype=x_nchw.dtype)
    else:
        # conv2 + bn2 + identity residual + relu, single kernel
        out = conv_bn(out1, params["w2"], params["bn2"], stride=1, pad=1,
                      relu=True, residual=x_nchw, out_dtype=x_nchw.dtype)
    return out


# ----------------------------------------------------------------------------
# Pure-JAX f32 reference (for correctness check)
# ----------------------------------------------------------------------------
def _ref_forward(x, params, stride):
    def conv(x, w, s, pad):
        return jax.lax.conv_general_dilated(
            x, w, window_strides=(s, s), padding=[(pad, pad), (pad, pad)],
            dimension_numbers=("NCHW", "HWIO", "NCHW"))

    def bn(x, p):
        g, b, m, v = (t[None, :, None, None] for t in p)
        return (x - m) / jnp.sqrt(v + BN_EPS) * g + b

    out = jax.nn.relu(bn(conv(x, params["w1"], stride, 1), params["bn1"]))
    out = bn(conv(out, params["w2"], 1, 1), params["bn2"])
    Cin, planes = x.shape[1], params["w1"].shape[-1]
    if stride != 1 or Cin != planes:
        sc = bn(conv(x, params["w_sc"], stride, 0), params["bn_sc"])
    else:
        sc = x
    return jax.nn.relu(out + sc)


# ----------------------------------------------------------------------------
def _init_params(key, in_planes, planes, stride):
    ks = jax.random.split(key, 6)

    def bn_params(k, c):
        k1, k2, k3, k4 = jax.random.split(k, 4)
        gamma = 1.0 + 0.1 * jax.random.normal(k1, (c,), jnp.float32)
        beta = 0.1 * jax.random.normal(k2, (c,), jnp.float32)
        mean = 0.1 * jax.random.normal(k3, (c,), jnp.float32)
        var = 0.5 + jax.random.uniform(k4, (c,), jnp.float32)
        return (gamma, beta, mean, var)

    params = {
        "w1": 0.1 * jax.random.normal(ks[0], (3, 3, in_planes, planes), jnp.float32),
        "bn1": bn_params(ks[1], planes),
        "w2": 0.1 * jax.random.normal(ks[2], (3, 3, planes, planes), jnp.float32),
        "bn2": bn_params(ks[3], planes),
    }
    if stride != 1 or in_planes != planes:
        params["w_sc"] = 0.1 * jax.random.normal(
            ks[4], (1, 1, in_planes, planes), jnp.float32)
        params["bn_sc"] = bn_params(ks[5], planes)
    return params


if __name__ == "__main__":
    key = jax.random.PRNGKey(0)

    def run_case(k, N, in_planes, planes, H, W, stride):
        kx, kp = jax.random.split(k)
        x = jax.random.normal(kx, (N, in_planes, H, W), jnp.float32)   # NCHW
        params = _init_params(kp, in_planes, planes, stride)

        fwd = jax.jit(functools.partial(basic_block_forward, stride=stride))
        out = jax.block_until_ready(fwd(x, params))

        ref = _ref_forward(x, params, stride)
        Ho = (H + 2 - 3) // stride + 1
        assert out.shape == (N, planes, Ho, Ho), out.shape
        # bf16 MXU operands (f32 accumulation / epilogue) vs. pure-f32 reference
        err = float(jnp.max(jnp.abs(out - ref)))
        assert jnp.allclose(out, ref, atol=3e-2, rtol=3e-2), err
        return err

    k1, k2 = jax.random.split(key)
    run_case(k1, N=2, in_planes=4, planes=8, H=16, W=16, stride=2)  # conv shortcut
    run_case(k2, N=2, in_planes=8, planes=8, H=8, W=8, stride=1)    # identity path

    print("KERNEL_OK")
</pallas_src>

<mosaic_0001>
module attributes {stable_mosaic.version = 11 : i64} {
  func.func @kernel(%arg0: i32, %arg1: memref<1x4x4x82xbf16, #tpu.memory_space<vmem>>, %arg2: memref<8x36xbf16, #tpu.memory_space<vmem>>, %arg3: memref<8x1xf32, #tpu.memory_space<vmem>>, %arg4: memref<1x8x72xbf16, #tpu.memory_space<vmem>>) attributes {dimension_semantics = [#tpu.dimension_semantics<parallel>], iteration_bounds = array<i64: 2>, scalar_prefetch = 0 : i64, scratch_operands = 0 : i64, tpu.core_type = #tpu.core_type<tc>, window_params = [{transform_indices = @transform_0, window_bounds = array<i64: 1, 4, 4, 82>}, {pipeline_mode = #tpu.pipeline_mode<synchronous>, transform_indices = @transform_1, window_bounds = array<i64: 8, 36>}, {pipeline_mode = #tpu.pipeline_mode<synchronous>, transform_indices = @transform_2, window_bounds = array<i64: 8, 1>}, {transform_indices = @transform_3, window_bounds = array<i64: 1, 8, 72>}]} {
    %c0 = arith.constant 0 : index
    %c0_0 = arith.constant 0 : index
    %c0_1 = arith.constant 0 : index
    %c0_2 = arith.constant 0 : index
    %0 = vector.load %arg1[%c0, %c0_0, %c0_1, %c0_2] : memref<1x4x4x82xbf16, #tpu.memory_space<vmem>>, vector<1x1x4x82xbf16>
    %1 = vector.shape_cast %0 : vector<1x1x4x82xbf16> to vector<4x82xbf16>
    %c0_3 = arith.constant 0 : index
    %c1 = arith.constant 1 : index
    %c0_4 = arith.constant 0 : index
    %c0_5 = arith.constant 0 : index
    %2 = vector.load %arg1[%c0_3, %c1, %c0_4, %c0_5] : memref<1x4x4x82xbf16, #tpu.memory_space<vmem>>, vector<1x1x4x82xbf16>
    %3 = vector.shape_cast %2 : vector<1x1x4x82xbf16> to vector<4x82xbf16>
    %c0_6 = arith.constant 0 : index
    %c2 = arith.constant 2 : index
    %c0_7 = arith.constant 0 : index
    %c0_8 = arith.constant 0 : index
    %4 = vector.load %arg1[%c0_6, %c2, %c0_7, %c0_8] : memref<1x4x4x82xbf16, #tpu.memory_space<vmem>>, vector<1x1x4x82xbf16>
    %5 = vector.shape_cast %4 : vector<1x1x4x82xbf16> to vector<4x82xbf16>
    %c0_9 = arith.constant 0 : index
    %c3 = arith.constant 3 : index
    %c0_10 = arith.constant 0 : index
    %c0_11 = arith.constant 0 : index
    %6 = vector.load %arg1[%c0_9, %c3, %c0_10, %c0_11] : memref<1x4x4x82xbf16, #tpu.memory_space<vmem>>, vector<1x1x4x82xbf16>
    %7 = vector.shape_cast %6 : vector<1x1x4x82xbf16> to vector<4x82xbf16>
    %8 = vector.extract_strided_slice %1 {offsets = [0, 0], sizes = [4, 72], strides = [1, 1]} : vector<4x82xbf16> to vector<4x72xbf16>
    %9 = vector.extract_strided_slice %3 {offsets = [0, 0], sizes = [4, 72], strides = [1, 1]} : vector<4x82xbf16> to vector<4x72xbf16>
    %10 = vector.extract_strided_slice %1 {offsets = [0, 1], sizes = [4, 72], strides = [1, 1]} : vector<4x82xbf16> to vector<4x72xbf16>
    %11 = vector.extract_strided_slice %5 {offsets = [0, 0], sizes = [4, 72], strides = [1, 1]} : vector<4x82xbf16> to vector<4x72xbf16>
    %12 = vector.extract_strided_slice %7 {offsets = [0, 0], sizes = [4, 72], strides = [1, 1]} : vector<4x82xbf16> to vector<4x72xbf16>
    %13 = vector.extract_strided_slice %5 {offsets = [0, 1], sizes = [4, 72], strides = [1, 1]} : vector<4x82xbf16> to vector<4x72xbf16>
    %14 = vector.extract_strided_slice %1 {offsets = [0, 9], sizes = [4, 72], strides = [1, 1]} : vector<4x82xbf16> to vector<4x72xbf16>
    %15 = vector.extract_strided_slice %3 {offsets = [0, 9], sizes = [4, 72], strides = [1, 1]} : vector<4x82xbf16> to vector<4x72xbf16>
    %16 = vector.extract_strided_slice %1 {offsets = [0, 10], sizes = [4, 72], strides = [1, 1]} : vector<4x82xbf16> to vector<4x72xbf16>
    %17 = tpu.concatenate %8, %9, %10, %11, %12, %13, %14, %15, %16 in 0 : vector<4x72xbf16>, vector<4x72xbf16>, vector<4x72xbf16>, vector<4x72xbf16>, vector<4x72xbf16>, vector<4x72xbf16>, vector<4x72xbf16>, vector<4x72xbf16>, vector<4x72xbf16> -> vector<36x72xbf16>
    %c0_12 = arith.constant 0 : index
    %c0_13 = arith.constant 0 : index
    %18 = vector.load %arg2[%c0_12, %c0_13] : memref<8x36xbf16, #tpu.memory_space<vmem>>, vector<8x36xbf16>
    %cst = arith.constant dense<0.000000e+00> : vector<8x72xf32>
    %19 = tpu.matmul %18, %17, %cst {dimension_numbers = #tpu.dot_dimension_numbers<[1], [0], [0], [1], [0, 0, 1, 1], [], []>} : vector<8x36xbf16>, vector<36x72xbf16>, vector<8x72xf32> -> vector<8x72xf32>
    %c0_14 = arith.constant 0 : index
    %c0_15 = arith.constant 0 : index
    %20 = vector.load %arg3[%c0_14, %c0_15] : memref<8x1xf32, #tpu.memory_space<vmem>>, vector<8x1xf32>
    %21 = vector.broadcast %20 : vector<8x1xf32> to vector<8x72xf32>
    %22 = arith.addf %19, %21 : vector<8x72xf32>
    %cst_16 = arith.constant 0.000000e+00 : f32
    %23 = vector.broadcast %cst_16 : f32 to vector<8x72xf32>
    %24 = arith.maximumf %22, %23 : vector<8x72xf32>
    %25 = arith.truncf %24 : vector<8x72xf32> to vector<8x72xbf16>
    %c0_17 = arith.constant 0 : index
    %c0_18 = arith.constant 0 : index
    %c0_19 = arith.constant 0 : index
    %26 = vector.load %arg4[%c0_17, %c0_18, %c0_19] : memref<1x8x72xbf16, #tpu.memory_space<vmem>>, vector<1x8x72xbf16>
    %27 = vector.shape_cast %26 : vector<1x8x72xbf16> to vector<8x72xbf16>
    %28 = vector.shape_cast %25 : vector<8x72xbf16> to vector<1x8x72xbf16>
    tpu.vector_store %arg4[%c0_17, %c0_18, %c0_19], %28 {strides = array<i32>} : memref<1x8x72xbf16, #tpu.memory_space<vmem>>, vector<1x8x72xbf16>,
    return
  }
  func.func @transform_0(%arg0: i32) -> (i32, i32, i32, i32) {
    %c0_i32 = arith.constant 0 : i32
    %c0_i32_0 = arith.constant 0 : i32
    %c0_i32_1 = arith.constant 0 : i32
    %c0_i32_2 = arith.constant 0 : i32
    return %arg0, %c0_i32, %c0_i32_0, %c0_i32_1 : i32, i32, i32, i32
  }
  func.func @transform_1(%arg0: i32) -> (i32, i32) {
    %c0_i32 = arith.constant 0 : i32
    %c0_i32_0 = arith.constant 0 : i32
    %c0_i32_1 = arith.constant 0 : i32
    return %c0_i32, %c0_i32_0 : i32, i32
  }
  func.func @transform_2(%arg0: i32) -> (i32, i32) {
    %c0_i32 = arith.constant 0 : i32
    %c0_i32_0 = arith.constant 0 : i32
    %c0_i32_1 = arith.constant 0 : i32
    return %c0_i32, %c0_i32_0 : i32, i32
  }
  func.func @transform_3(%arg0: i32) -> (i32, i32, i32) {
    %c0_i32 = arith.constant 0 : i32
    %c0_i32_0 = arith.constant 0 : i32
    %c0_i32_1 = arith.constant 0 : i32
    return %arg0, %c0_i32, %c0_i32_0 : i32, i32, i32
  }
}

module attributes {stable_mosaic.version = 11 : i64} {
  func.func @kernel(%arg0: i32, %arg1: memref<1x1x8x102xbf16, #tpu.memory_space<vmem>>, %arg2: memref<8x72xbf16, #tpu.memory_space<vmem>>, %arg3: memref<8x1xf32, #tpu.memory_space<vmem>>, %arg4: memref<1x4x80xbf16, #tpu.memory_space<vmem>>, %arg5: memref<8x4xbf16, #tpu.memory_space<vmem>>, %arg6: memref<8x1xf32, #tpu.memory_space<vmem>>, %arg7: memref<1x8x80xf32, #tpu.memory_space<vmem>>) attributes {dimension_semantics = [#tpu.dimension_semantics<parallel>], iteration_bounds = array<i64: 2>, scalar_prefetch = 0 : i64, scratch_operands = 0 : i64, tpu.core_type = #tpu.core_type<tc>, window_params = [{transform_indices = @transform_0, window_bounds = array<i64: 1, 1, 8, 102>}, {pipeline_mode = #tpu.pipeline_mode<synchronous>, transform_indices = @transform_1, window_bounds = array<i64: 8, 72>}, {pipeline_mode = #tpu.pipeline_mode<synchronous>, transform_indices = @transform_2, window_bounds = array<i64: 8, 1>}, {transform_indices = @transform_3, window_bounds = array<i64: 1, 4, 80>}, {pipeline_mode = #tpu.pipeline_mode<synchronous>, transform_indices = @transform_4, window_bounds = array<i64: 8, 4>}, {pipeline_mode = #tpu.pipeline_mode<synchronous>, transform_indices = @transform_5, window_bounds = array<i64: 8, 1>}, {transform_indices = @transform_6, window_bounds = array<i64: 1, 8, 80>}]} {
    %c0 = arith.constant 0 : index
    %c0_0 = arith.constant 0 : index
    %c0_1 = arith.constant 0 : index
    %c0_2 = arith.constant 0 : index
    %0 = vector.load %arg1[%c0, %c0_0, %c0_1, %c0_2] : memref<1x1x8x102xbf16, #tpu.memory_space<vmem>>, vector<1x1x8x102xbf16>
    %1 = vector.shape_cast %0 : vector<1x1x8x102xbf16> to vector<8x102xbf16>
    %2 = vector.extract_strided_slice %1 {offsets = [0, 0], sizes = [8, 80], strides = [1, 1]} : vector<8x102xbf16> to vector<8x80xbf16>
    %3 = vector.extract_strided_slice %1 {offsets = [0, 1], sizes = [8, 80], strides = [1, 1]} : vector<8x102xbf16> to vector<8x80xbf16>
    %4 = vector.extract_strided_slice %1 {offsets = [0, 2], sizes = [8, 80], strides = [1, 1]} : vector<8x102xbf16> to vector<8x80xbf16>
    %5 = vector.extract_strided_slice %1 {offsets = [0, 10], sizes = [8, 80], strides = [1, 1]} : vector<8x102xbf16> to vector<8x80xbf16>
    %6 = vector.extract_strided_slice %1 {offsets = [0, 11], sizes = [8, 80], strides = [1, 1]} : vector<8x102xbf16> to vector<8x80xbf16>
    %7 = vector.extract_strided_slice %1 {offsets = [0, 12], sizes = [8, 80], strides = [1, 1]} : vector<8x102xbf16> to vector<8x80xbf16>
    %8 = vector.extract_strided_slice %1 {offsets = [0, 20], sizes = [8, 80], strides = [1, 1]} : vector<8x102xbf16> to vector<8x80xbf16>
    %9 = vector.extract_strided_slice %1 {offsets = [0, 21], sizes = [8, 80], strides = [1, 1]} : vector<8x102xbf16> to vector<8x80xbf16>
    %10 = vector.extract_strided_slice %1 {offsets = [0, 22], sizes = [8, 80], strides = [1, 1]} : vector<8x102xbf16> to vector<8x80xbf16>
    %11 = tpu.concatenate %2, %3, %4, %5, %6, %7, %8, %9, %10 in 0 : vector<8x80xbf16>, vector<8x80xbf16>, vector<8x80xbf16>, vector<8x80xbf16>, vector<8x80xbf16>, vector<8x80xbf16>, vector<8x80xbf16>, vector<8x80xbf16>, vector<8x80xbf16> -> vector<72x80xbf16>
    %c0_3 = arith.constant 0 : index
    %c0_4 = arith.constant 0 : index
    %12 = vector.load %arg2[%c0_3, %c0_4] : memref<8x72xbf16, #tpu.memory_space<vmem>>, vector<8x72xbf16>
    %cst = arith.constant dense<0.000000e+00> : vector<8x80xf32>
    %13 = tpu.matmul %12, %11, %cst {dimension_numbers = #tpu.dot_dimension_numbers<[1], [0], [0], [1], [0, 0, 1, 1], [], []>} : vector<8x72xbf16>, vector<72x80xbf16>, vector<8x80xf32> -> vector<8x80xf32>
    %c0_5 = arith.constant 0 : index
    %c0_6 = arith.constant 0 : index
    %14 = vector.load %arg3[%c0_5, %c0_6] : memref<8x1xf32, #tpu.memory_space<vmem>>, vector<8x1xf32>
    %15 = vector.broadcast %14 : vector<8x1xf32> to vector<8x80xf32>
    %16 = arith.addf %13, %15 : vector<8x80xf32>
    %c0_7 = arith.constant 0 : index
    %c0_8 = arith.constant 0 : index
    %17 = vector.load %arg5[%c0_7, %c0_8] : memref<8x4xbf16, #tpu.memory_space<vmem>>, vector<8x4xbf16>
    %c0_9 = arith.constant 0 : index
    %c0_10 = arith.constant 0 : index
    %c0_11 = arith.constant 0 : index
    %18 = vector.load %arg4[%c0_9, %c0_10, %c0_11] : memref<1x4x80xbf16, #tpu.memory_space<vmem>>, vector<1x4x80xbf16>
    %19 = vector.shape_cast %18 : vector<1x4x80xbf16> to vector<4x80xbf16>
    %cst_12 = arith.constant dense<0.000000e+00> : vector<8x80xf32>
    %20 = tpu.matmul %17, %19, %cst_12 {dimension_numbers = #tpu.dot_dimension_numbers<[1], [0], [0], [1], [0, 0, 1, 1], [], []>} : vector<8x4xbf16>, vector<4x80xbf16>, vector<8x80xf32> -> vector<8x80xf32>
    %21 = arith.addf %16, %20 : vector<8x80xf32>
    %c0_13 = arith.constant 0 : index
    %c0_14 = arith.constant 0 : index
    %22 = vector.load %arg6[%c0_13, %c0_14] : memref<8x1xf32, #tpu.memory_space<vmem>>, vector<8x1xf32>
    %23 = vector.broadcast %22 : vector<8x1xf32> to vector<8x80xf32>
    %24 = arith.addf %21, %23 : vector<8x80xf32>
    %cst_15 = arith.constant 0.000000e+00 : f32
    %25 = vector.broadcast %cst_15 : f32 to vector<8x80xf32>
    %26 = arith.maximumf %24, %25 : vector<8x80xf32>
    %c0_16 = arith.constant 0 : index
    %c0_17 = arith.constant 0 : index
    %c0_18 = arith.constant 0 : index
    %27 = vector.load %arg7[%c0_16, %c0_17, %c0_18] : memref<1x8x80xf32, #tpu.memory_space<vmem>>, vector<1x8x80xf32>
    %28 = vector.shape_cast %27 : vector<1x8x80xf32> to vector<8x80xf32>
    %29 = vector.shape_cast %26 : vector<8x80xf32> to vector<1x8x80xf32>
    tpu.vector_store %arg7[%c0_16, %c0_17, %c0_18], %29 {strides = array<i32>} : memref<1x8x80xf32, #tpu.memory_space<vmem>>, vector<1x8x80xf32>,
    return
  }
  func.func @transform_0(%arg0: i32) -> (i32, i32, i32, i32) {
    %c0_i32 = arith.constant 0 : i32
    %c0_i32_0 = arith.constant 0 : i32
    %c0_i32_1 = arith.constant 0 : i32
    %c0_i32_2 = arith.constant 0 : i32
    return %arg0, %c0_i32, %c0_i32_0, %c0_i32_1 : i32, i32, i32, i32
  }
  func.func @transform_1(%arg0: i32) -> (i32, i32) {
    %c0_i32 = arith.constant 0 : i32
    %c0_i32_0 = arith.constant 0 : i32
    %c0_i32_1 = arith.constant 0 : i32
    return %c0_i32, %c0_i32_0 : i32, i32
  }
  func.func @transform_2(%arg0: i32) -> (i32, i32) {
    %c0_i32 = arith.constant 0 : i32
    %c0_i32_0 = arith.constant 0 : i32
    %c0_i32_1 = arith.constant 0 : i32
    return %c0_i32, %c0_i32_0 : i32, i32
  }
  func.func @transform_3(%arg0: i32) -> (i32, i32, i32) {
    %c0_i32 = arith.constant 0 : i32
    %c0_i32_0 = arith.constant 0 : i32
    %c0_i32_1 = arith.constant 0 : i32
    return %arg0, %c0_i32, %c0_i32_0 : i32, i32, i32
  }
  func.func @transform_4(%arg0: i32) -> (i32, i32) {
    %c0_i32 = arith.constant 0 : i32
    %c0_i32_0 = arith.constant 0 : i32
    %c0_i32_1 = arith.constant 0 : i32
    return %c0_i32, %c0_i32_0 : i32, i32
  }
  func.func @transform_5(%arg0: i32) -> (i32, i32) {
    %c0_i32 = arith.constant 0 : i32
    %c0_i32_0 = arith.constant 0 : i32
    %c0_i32_1 = arith.constant 0 : i32
    return %c0_i32, %c0_i32_0 : i32, i32
  }
  func.func @transform_6(%arg0: i32) -> (i32, i32, i32) {
    %c0_i32 = arith.constant 0 : i32
    %c0_i32_0 = arith.constant 0 : i32
    %c0_i32_1 = arith.constant 0 : i32
    return %arg0, %c0_i32, %c0_i32_0 : i32, i32, i32
  }
}

</mosaic_0001>

<bundles_post_ra>
// kernel: basic_block_forward.3
= control target key start
LH: loop header
LB: loop body
LE: loop exit
PB: predicated region body
PF: predicated region fallthrough
CT: control target
= control target key end

     0   :  { %s599_s21 = smov 0   ;;  %s649_s0 = inlined_call_operand.vmem [shape: bf16[2,1,8,102], index: 0, kind: input, shape index: {}]   ;;  %s650_s1 = inlined_call_operand.vmem [shape: bf16[8,72], index: 1, kind: input, shape index: {}]   ;;  %s651_s2 = inlined_call_operand.vmem [shape: f32[8,1], index: 2, kind: input, shape index: {}]   ;;  %s652_s3 = inlined_call_operand.vmem [shape: bf16[2,4,80], index: 3, kind: input, shape index: {}]   ;;  %s653_s4 = inlined_call_operand.vmem [shape: bf16[8,4], index: 4, kind: input, shape index: {}]   ;;  %s654_s5 = inlined_call_operand.vmem [shape: f32[8,1], index: 5, kind: input, shape index: {}]   ;;  %s655_s6 = inlined_call_operand.vmem [shape: f32[2,8,80], index: 6, kind: output, shape index: {}]  }
   0x1 LB: > { %s482_s22 = sadd.s32 4294967295, %s551_s21   ;;  %p486_p0 = scmp.ge.s32.totalorder %s551_s21, 1  ;;  %s551_s21 = sphi %s599_s21, %s16_s21  }
   0x2   : > { %p220_p1 = scmp.lt.s32.totalorder %s551_s21, 3 }
   0x4   : > { %p221_p2 = pnand %p486_p0, %p220_p1 }
   0x5   : > { %p252_p3 = scmp.lt.s32.totalorder (!%p221_p2), %s482_s22, 1  ;;  %s554_s7 = smov (!%p221_p2), 106  }
   0x6   : > { %224 = sbr.rel (%p221_p2) target bundleno = 354 (0x162), region = 44  ;;  %s555_s8 = smov (!%p221_p2), 107  }
   0x7   : > { %s557_s11 = smov (!%p221_p2), 108   ;;  %s558_s12 = smov (!%p221_p2), 117  }
   0x8   : > { %s559_s13 = smov (!%p221_p2), 116   ;;  %s560_s14 = smov (!%p221_p2), 126  }
   0x9   : > { %s562_s15 = smov (!%p221_p2), 118   ;;  %s563_s16 = smov (!%p221_p2), 127  }
   0xb   : > { %v553_v0 = vmov 0.0   ;;  %s657_s22 = smov (!%p252_p3, %s482_s22), 1  ;;  %vm362_vm0 = vcmask 1041408   ;;  %vm556_vm1 = vmmov 0   ;;  %v356_v5 = vld [vmem:[%s653_s4] sm:$0xf] }
   0xc   : > { %503 = vmatprep.subr.bf16.mxu0 %v553_v0  ;;  %517 = vmatprep.subr.bf16.mxu1 %v553_v0  ;;  %s487_s23 = sshll.u32 %s657_s22, 2  ;;  %s488_s27 = sshll.u32 %s657_s22, 1  ;;  %vm358_vm2 = vcmask 31744   ;;  %v561_v6 = vmov 0   ;;  %v303_v7 = vld [vmem:[%s651_s2] sm:$0xff]  ;;  %vm285_vm3 = vcmask 1043456  }
   0xd   : > { %s255_s26 = scalar_lea.vmem %s649_s0, %s487_s23  ;;  %s259_s30 = scalar_lea.vmem %s652_s3, %s488_s27  ;;  %519 = vmatprep.mubr.msk.bf16.mxu1 %vm556_vm1, %v553_v0  ;;  %513 = vmatprep.mubr.msk.bf16.mxu0 %vm556_vm1, %v553_v0  ;;  %v407_v8 = vld [vmem:[%s654_s5] sm:$0xff]  ;;  %vm309_vm4 = vcmask 588800   ;;  %vm415_vm5 = vcmask 654336  }
   0xe   : > { %v265_v1 = vld [vmem:[%s255_s26] sm:$0xf]  ;;  %542 = vset.pattern.permute.xlu0 %v561_v6  ;;  %543 = vset.pattern.permute.xlu1 %v561_v6  ;;  %s489_s25 = sshll.u32 %s657_s22, 3 }
   0xf   : > { %v490_v2 = vcombine.low %v265_v1, %v265_v1  ;;  %v357_v3 = vld [vmem:[%s259_s30] sm:$0x3]  ;;  %s263_s28 = scalar_lea.vmem %s655_s6, %s489_s25 }
  0x10   : > { %v364_v4 = vsel %vm362_vm0, %v357_v3, 0  ;;  %v302_v22 = vld [vmem:[%s650_s1] sm:$0xf] }
  0x11   : > { %283 = vrot.lane.b32.xlu0 %v490_v2, %s554_s7  ;;  %281 = vrot.lane.b32.xlu1 %v490_v2, %s555_s8 }
  0x12   : > { %518 = vmatpush3.bf16.msra.mxu1 %v364_v4 }
  0x15   : > { %279 = vrot.lane.b32.xlu0 %v490_v2, %s557_s11  ;;  %275 = vrot.lane.b32.xlu1 %v490_v2, %s558_s12 }
  0x16   : > { %520 = vmatmul.mubr.msk.bf16.vlgmr.msra.gmra.mxu1 %vm358_vm2, %v356_v5 }
  0x19   : > { %277 = vrot.lane.b32.xlu0 %v490_v2, %s559_s13  ;;  %271 = vrot.lane.b32.xlu1 %v490_v2, %s560_s14 }
  0x1d   : > { %273 = vrot.lane.b32.xlu0 %v490_v2, %s562_s15  ;;  %269 = vrot.lane.b32.xlu1 %v490_v2, %s563_s16 }
  0x21   : > { %306 = vperm.xlu0 %542, %v303_v7   ;;  %410 = vperm.xlu1 %543, %v407_v8  }
  0x83   : > { %v284_v9 = vpop.permute.xlu0 %283  ;;  %v282_v10 = vpop.permute.xlu1 %281 }
  0x84   : > { %v314_v11 = vsel %vm285_vm3, %v284_v9, 0 }
  0x85   : > { %504 = vmatpush3.bf16.msra.mxu0 %v314_v11 }
  0x86   : > { %505 = vmatprep.subr.bf16.mxu0 %v553_v0 }
  0x87   : > { %v280_v12 = vpop.permute.xlu0 %279  ;;  %v276_v13 = vpop.permute.xlu1 %275 }
  0x88   : > { %v300_v14 = vsel %vm285_vm3, %v280_v12, %v282_v10 }
  0x89   : > { %506 = vmatpush3.bf16.msra.mxu0 %v300_v14 }
  0x8a   : > { %507 = vmatprep.subr.bf16.mxu0 %v553_v0 }
  0x8b   : > { %v278_v15 = vpop.permute.xlu0 %277  ;;  %v272_v16 = vpop.permute.xlu1 %271 }
  0x8c   : > { %v296_v17 = vsel %vm285_vm3, %v276_v13, %v278_v15 }
  0x8d   : > { %508 = vmatpush3.bf16.msra.mxu0 %v296_v17 }
  0x8e   : > { %509 = vmatprep.subr.bf16.mxu0 %v553_v0 }
  0x8f   : > { %v274_v18 = vpop.permute.xlu0 %273  ;;  %v270_v19 = vpop.permute.xlu1 %269 }
  0x90   : > { %v292_v20 = vsel %vm285_vm3, %v272_v16, %v274_v18  ;;  %v288_v21 = vsel %vm285_vm3, %v265_v1, %v270_v19 }
  0x91   : > { %510 = vmatpush3.bf16.msra.mxu0 %v292_v20 }
  0x92   : > { %511 = vmatprep.subr.bf16.mxu0 %v553_v0 }
  0x95   : > { %512 = vmatpush3.bf16.msra.mxu0 %v288_v21 }
  0x98   : > { %514 = vmatmul.mubr.msk.bf16.vlgmr.msra.gmra.mxu0 %vm309_vm4, %v302_v22 }
  0x9c   : > { %v307_v27 = vpop.permute.xlu0 %306  ;;  %v411_v31 = vpop.permute.xlu1 %410 }
  0xd6   : > { %v400_v23 = vpop.f32.mrf.mxu1 }
  0xd8   : > { %v521_v24 = vpop.f32.mrf.mxu1 }
  0xda   : > { %v403_v25 = vpop.f32.mrf.mxu1 }
  0xdc   : > { %v522_v26 = vpop.f32.mrf.mxu1 }
 0x158   : > { %v350_v28 = vpop.f32.mrf.mxu0 }
 0x159   : > { %v351_v29 = vadd.f32 %v350_v28, %v307_v27 }
 0x15a   : > { %v515_v30 = vpop.f32.mrf.mxu0 }
 0x15b   : > { %v406_v32 = vadd.f32 %v400_v23, %v351_v29 }
 0x15c   : > { %v353_v33 = vpop.f32.mrf.mxu0 }
 0x15d   : > { %v413_v34 = vadd.f32 %v411_v31, %v406_v32 }
 0x15e   : > { %v516_v35 = vpop.f32.mrf.mxu0 }
 0x15f   : > { %v414_v36 = vmax.f32 %v413_v34, 0.0 }
 0x161   : > { %416 = vst.msk [vmem:[%s263_s28] sm:$0xff] %vm415_vm5, %v414_v36 }
 0x162 PF: > { %s16_s21 = sadd.s32 1, %s551_s21  }
 0x163   : > { %p13_p4 = scmp.ge.s32.totalorder %s16_s21, 4  }
 0x165   :  { %15 = sbr.rel (!%p13_p4) target bundleno = 1 (0x1), region = 77 }

// kernel: basic_block_forward.2
= control target key start
LH: loop header
LB: loop body
LE: loop exit
PB: predicated region body
PF: predicated region fallthrough
CT: control target
= control target key end

     0   :  { %s429_s12 = smov 0   ;;  %s465_s0 = inlined_call_operand.vmem [shape: bf16[2,4,4,82], index: 0, kind: input, shape index: {}]   ;;  %s466_s1 = inlined_call_operand.vmem [shape: bf16[8,36], index: 1, kind: input, shape index: {}]   ;;  %s467_s2 = inlined_call_operand.vmem [shape: f32[8,1], index: 2, kind: input, shape index: {}]   ;;  %s468_s3 = inlined_call_operand.vmem [shape: bf16[2,8,72], index: 3, kind: output, shape index: {}]  }
   0x1 LB: > { %s346_s13 = sadd.s32 4294967295, %s400_s12   ;;  %p350_p0 = scmp.ge.s32.totalorder %s400_s12, 1  ;;  %s400_s12 = sphi %s429_s12, %s13_s12  }
   0x2   : > { %p137_p1 = scmp.lt.s32.totalorder %s400_s12, 3 }
   0x4   : > { %p138_p2 = pnand %p350_p0, %p137_p1 }
   0x5   : > { %p160_p3 = scmp.lt.s32.totalorder (!%p138_p2), %s346_s13, 1  ;;  %s404_s18 = smov (!%p138_p2), 118  }
   0x6   : > { %141 = sbr.rel (%p138_p2) target bundleno = 349 (0x15d), region = 32  ;;  %s406_s19 = smov (!%p138_p2), 119  }
   0x7   : > { %s408_s20 = smov (!%p138_p2), 127  }
   0xb   : > { %v182_v0 = vlaneseq  ;;  %v402_v1 = vmov 1983009808   ;;  %v403_v3 = vmov 0.0   ;;  %s470_s13 = smov (!%p160_p3, %s346_s13), 1  ;;  %vm405_vm0 = vmmov 0   ;;  %v236_v17 = vld [vmem:[%s467_s2] sm:$0xff] }
   0xc   : > { %v180_v2 = vunpack.c.l.s4 %v402_v1  ;;  %365 = vmatprep.subr.bf16.mxu0 %v403_v3  ;;  %s360_s14 = sshll.u32 %s470_s13, 3  ;;  %371 = vmatprep.mubr.msk.bf16.mxu0 %vm405_vm0, %v403_v3  ;;  %vm216_vm1 = vcmask 1041408   ;;  %v407_v16 = vmov 0   ;;  %vm220_vm2 = vcmask 1043456   ;;  %v235_v31 = vld [vmem:[%s466_s1] sm:$0xf] }
   0xd   : > { %v183_v4 = vshrl.u32 %v182_v0, 7  ;;  %s443_s17 = scalar_lea.vmem %s465_s0, %s360_s14  ;;  %391 = vset.pattern.permute.xlu0 %v407_v16  ;;  %390 = vset.pattern.permute.xlu1 %v407_v16  ;;  %vm223_vm3 = vcmask 1045504   ;;  %vm242_vm4 = vcmask 293888   ;;  %s353_s25 = sshll.u32 %s470_s13, 2  ;;  %vm291_vm5 = vcmask 584704  }
   0xe   : > { %v181_v5 = vunpack.c.0.s8 %v180_v2  ;;  %v170_v7 = vld [vmem:[%s443_s17] sm:$0x3]  ;;  %v392_v9 = vld [vmem:[%s443_s17 + $0x4] ss:$0 sps:$4 sm:$0x33]   ;;  %s168_s28 = scalar_lea.vmem %s468_s3, %s353_s25 }
   0xf   : > { %v393_v10 = vld [vmem:[%s443_s17 + $0x2] ss:$0 sps:$4 sm:$0x33]   ;;  %v356_v21 = vld [vmem:[%s443_s17 + $0x6] sm:$0x3] }
  0x10   : > { %v184_v6 = vsub.s32 %v181_v5, %v183_v4 }
  0x12   : > { %v193_v8 = vrot.slane %v170_v7, %v184_v6  ;;  %v205_v12 = vrot.slane %v392_v9, %v184_v6  ;;  %v185_v13 = vrot.slane %v393_v10, %v184_v6 }
  0x14   : > { %214 = vrot.lane.b32.xlu0 %v193_v8, %s404_s18  ;;  %v194_v11 = vcombine.low %v193_v8, %v193_v8  ;;  %v211_v14 = vcombine.low %v185_v13, %v185_v13  ;;  %v219_v15 = vsel %vm216_vm1, %v170_v7, %v185_v13  ;;  %v206_v24 = vcombine.low %v205_v12, %v205_v12 }
  0x16   : > { %209 = vrot.lane.b32.xlu1 %v194_v11, %s406_s19 }
  0x18   : > { %207 = vrot.lane.b32.xlu0 %v205_v12, %s408_s20 }
  0x1a   : > { %212 = vrot.lane.b32.xlu1 %v211_v14, %s406_s19 }
  0x1c   : > { %195 = vrot.lane.b32.xlu0 %v194_v11, %s408_s20 }
  0x1e   : > { %239 = vperm.xlu1 %390, %v236_v17  }
  0x86   : > { %v215_v18 = vpop.permute.xlu0 %214 }
  0x87   : > { %v247_v19 = vsel %vm216_vm1, %v215_v18, 0 }
  0x88   : > { %366 = vmatpush3.bf16.msra.mxu0 %v247_v19  ;;  %v210_v20 = vpop.permute.xlu1 %209 }
  0x89   : > { %367 = vmatprep.subr.bf16.mxu0 %v403_v3 }
  0x8a   : > { %v208_v22 = vpop.permute.xlu0 %207 }
  0x8b   : > { %v229_v23 = vsel %vm216_vm1, %v356_v21, %v208_v22 }
  0x8c   : > { %v213_v25 = vpop.permute.xlu1 %212  ;;  %v231_v26 = vsel %vm220_vm2, %v229_v23, %v210_v20 }
  0x8d   : > { %v233_v27 = vsel %vm223_vm3, %v231_v26, %v213_v25 }
  0x8e   : > { %368 = vmatpush3.bf16.msra.mxu0 %v233_v27  ;;  %v196_v28 = vpop.permute.xlu0 %195 }
  0x8f   : > { %v222_v29 = vsel %vm220_vm2, %v219_v15, %v196_v28  ;;  %369 = vmatprep.subr.bf16.mxu0 %v403_v3 }
  0x90   : > { %v225_v30 = vsel %vm223_vm3, %v222_v29, %v206_v24 }
  0x92   : > { %370 = vmatpush3.bf16.msra.mxu0 %v225_v30 }
  0x95   : > { %372 = vmatmul.mubr.msk.bf16.vlgmr.msra.gmra.mxu0 %vm242_vm4, %v235_v31 }
  0x99   : > { %v240_v32 = vpop.permute.xlu1 %239 }
 0x155   : > { %v283_v33 = vpop.f32.mrf.mxu0 }
 0x156   : > { %v284_v34 = vadd.f32 %v283_v33, %v240_v32 }
 0x157   : > { %v373_v35 = vpop.f32.mrf.mxu0 }
 0x158   : > { %v289_v36 = vmax.f32 %v284_v34, 0.0 }
 0x159   : > { %v286_v37 = vpop.f32.mrf.mxu0 }
 0x15a   : > { %v290_v38 = vpack.c.bf16 %v289_v36, %v289_v36 }
 0x15b   : > { %v374_v39 = vpop.f32.mrf.mxu0 }
 0x15c   : > { %292 = vst.msk [vmem:[%s168_s28] sm:$0xf] %vm291_vm5, %v290_v38 }
 0x15d PF: > { %s13_s12 = sadd.s32 1, %s400_s12  }
 0x15e   : > { %p10_p4 = scmp.ge.s32.totalorder %s13_s12, 4  }
 0x160   :  { %12 = sbr.rel (!%p10_p4) target bundleno = 1 (0x1), region = 65 }

</bundles_post_ra>
